<compile_context>
chip_gen: v7x
topology: tpu7x:2x2x1
jax: 0.10.0
libtpu: 0.0.40
codegen_flags: <defaults>
</compile_context>

<pallas_src>
import math

import jax
import jax.numpy as jnp
from jax import lax
from jax.experimental import pallas as pl
from jax.experimental.pallas import tpu as pltpu


def kinematic_lstm_kernel(
    x_ref,        # (S, I)  -- only batch row B-1 (the one the head uses)
    w_in_ref,     # (I, H)
    b_in_ref,     # (1, H)
    w_ih_ref,     # (H, 4H)
    b_ih_ref,     # (1, 4H)
    w_hh_ref,     # (H, 4H)
    b_hh_ref,     # (1, 4H)
    w_out_ref,    # (H, O)
    b_out_ref,    # (1, O)
    out_ref,      # (S, O)
    gx_ref,       # scratch VMEM (S, 4H): hoisted input-side gate pre-activations
    hs_ref,       # scratch VMEM (S, H):  per-step hidden states
):
    S, _ = x_ref.shape
    H = w_in_ref.shape[1]

    # ---- input linear + ReLU (dropout p=0.0 => identity) ----
    h_in = jnp.maximum(
        jnp.dot(x_ref[...], w_in_ref[...], preferred_element_type=jnp.float32)
        + b_in_ref[...],
        0.0,
    )                                                   # (S, H)

    # ---- hoisted (out of the recurrence) gate-column rescale + biases ----
    # tanh(x) = 2*sigmoid(2x) - 1, so scale the g-gate columns by 2 once and
    # run a single full-width sigmoid per step instead of 4 sliced activations.
    col = lax.broadcasted_iota(jnp.int32, (1, 4 * H), 1)
    g_scale = jnp.where((col >= 2 * H) & (col < 3 * H), 2.0, 1.0).astype(jnp.float32)
    w_ih_s = w_ih_ref[...] * g_scale                    # (H, 4H)
    w_hh_s = w_hh_ref[...] * g_scale                    # (H, 4H)
    b_g = (b_ih_ref[...] + b_hh_ref[...]) * g_scale     # (1, 4H)

    # ---- hoisted input-to-gate projection for ALL timesteps at once ----
    gx_ref[...] = (
        jnp.dot(h_in, w_ih_s, preferred_element_type=jnp.float32) + b_g
    )                                                   # (S, 4H)

    # ---- LSTM recurrence (only the recurrent matmul stays in the loop) ----
    def step(t, carry):
        h, c = carry                                    # each (1, H)
        gates = gx_ref[pl.ds(t, 1), :] + jnp.dot(
            h, w_hh_s, preferred_element_type=jnp.float32
        )                                               # (1, 4H)
        s = jax.nn.sigmoid(gates)                       # one full-vreg EUP push
        i_g = s[:, 0 * H:1 * H]
        f_g = s[:, 1 * H:2 * H]
        g_g = 2.0 * s[:, 2 * H:3 * H] - 1.0             # == tanh(pre-activation)
        o_g = s[:, 3 * H:4 * H]
        c_new = f_g * c + i_g * g_g
        h_new = o_g * jnp.tanh(c_new)
        hs_ref[pl.ds(t, 1), :] = h_new
        return (h_new, c_new)

    h0 = jnp.zeros((1, H), jnp.float32)
    c0 = jnp.zeros((1, H), jnp.float32)
    lax.fori_loop(0, S, step, (h0, c0), unroll=True)

    # ---- output linear on the (S, H) hidden trajectory ----
    out_ref[...] = (
        jnp.dot(hs_ref[...], w_out_ref[...], preferred_element_type=jnp.float32)
        + b_out_ref[...]
    )


def kinematic_lin_rnn_forward(x, params):
    """x: (seq_len, batch, input_size) -> (seq_len, output_size)."""
    S, B, _ = x.shape
    H = params["w_in"].shape[1]
    O = params["w_out"].shape[1]

    # out[:, -1, :] only reads batch row B-1, and LSTM batch rows are
    # independent with zero initial state -> prune the batch before the kernel.
    x_last = x[:, B - 1, :]                             # (S, I)

    vmem = pl.BlockSpec(memory_space=pltpu.MemorySpace.VMEM)
    return pl.pallas_call(
        kinematic_lstm_kernel,
        out_shape=jax.ShapeDtypeStruct((S, O), jnp.float32),
        in_specs=[vmem] * 9,
        out_specs=vmem,
        scratch_shapes=[
            pltpu.VMEM((S, 4 * H), jnp.float32),        # gates_x
            pltpu.VMEM((S, H), jnp.float32),            # hidden states
        ],
    )(
        x_last,
        params["w_in"], params["b_in"],
        params["w_ih"], params["b_ih"],
        params["w_hh"], params["b_hh"],
        params["w_out"], params["b_out"],
    )


def reference_forward(x, params):
    """Pure-JAX reference mirroring the PyTorch forward exactly (full batch)."""
    S, B, _ = x.shape
    H = params["w_in"].shape[1]
    h_in = jax.nn.relu(x @ params["w_in"] + params["b_in"][0])   # (S, B, H)

    h = jnp.zeros((B, H), jnp.float32)
    c = jnp.zeros((B, H), jnp.float32)
    outs = []
    for t in range(S):
        gates = (h_in[t] @ params["w_ih"] + params["b_ih"][0]
                 + h @ params["w_hh"] + params["b_hh"][0])
        i_g = jax.nn.sigmoid(gates[:, 0 * H:1 * H])
        f_g = jax.nn.sigmoid(gates[:, 1 * H:2 * H])
        g_g = jnp.tanh(gates[:, 2 * H:3 * H])
        o_g = jax.nn.sigmoid(gates[:, 3 * H:4 * H])
        c = f_g * c + i_g * g_g
        h = o_g * jnp.tanh(c)
        outs.append(h)
    out = jnp.stack(outs)                                        # (S, B, H)
    lstm_out = out[:, -1, :]                                     # (S, H)
    return lstm_out @ params["w_out"] + params["b_out"][0]       # (S, O)


def init_params(key, input_size, hidden_size, output_size):
    ks = jax.random.split(key, 9)
    bi = 1.0 / math.sqrt(input_size)
    bh = 1.0 / math.sqrt(hidden_size)
    u = lambda k, shape, b: jax.random.uniform(
        k, shape, jnp.float32, minval=-b, maxval=b)
    return {
        # nn.Linear(input_size, hidden_size), stored transposed (I, H)
        "w_in": u(ks[0], (input_size, hidden_size), bi),
        "b_in": u(ks[1], (1, hidden_size), bi),
        # nn.LSTM weights, stored transposed: (H, 4H), gate order [i, f, g, o]
        "w_ih": u(ks[2], (hidden_size, 4 * hidden_size), bh),
        "b_ih": u(ks[3], (1, 4 * hidden_size), bh),
        "w_hh": u(ks[4], (hidden_size, 4 * hidden_size), bh),
        "b_hh": u(ks[5], (1, 4 * hidden_size), bh),
        # nn.Linear(hidden_size, output_size), stored transposed (H, O)
        "w_out": u(ks[6], (hidden_size, output_size), bh),
        "b_out": u(ks[7], (1, output_size), bh),
    }


if __name__ == "__main__":
    SEQ, BATCH, INPUT, HIDDEN, OUTPUT = 8, 2, 16, 32, 4

    key = jax.random.PRNGKey(0)
    k_x, k_p = jax.random.split(key)
    x = jax.random.normal(k_x, (SEQ, BATCH, INPUT), jnp.float32)
    params = init_params(k_p, INPUT, HIDDEN, OUTPUT)

    y = kinematic_lin_rnn_forward(x, params)
    y = jax.block_until_ready(y)

    y_ref = reference_forward(x, params)
    assert y.shape == (SEQ, OUTPUT)
    assert jnp.allclose(y, y_ref, rtol=1e-4, atol=1e-4), (
        f"mismatch: max err {jnp.max(jnp.abs(y - y_ref))}")

    # TODO(synk): if many independent sequences are processed, add a leading
    # "parallel" grid axis over sequences to use both v7x TensorCores.
    print("KERNEL_OK")
</pallas_src>

<mosaic_0001>
module attributes {stable_mosaic.version = 11 : i64} {
  func.func @kinematic_lstm_kernel(%arg0: memref<8x16xf32, #tpu.memory_space<vmem>>, %arg1: memref<16x32xf32, #tpu.memory_space<vmem>>, %arg2: memref<1x32xf32, #tpu.memory_space<vmem>>, %arg3: memref<32x128xf32, #tpu.memory_space<vmem>>, %arg4: memref<1x128xf32, #tpu.memory_space<vmem>>, %arg5: memref<32x128xf32, #tpu.memory_space<vmem>>, %arg6: memref<1x128xf32, #tpu.memory_space<vmem>>, %arg7: memref<32x4xf32, #tpu.memory_space<vmem>>, %arg8: memref<1x4xf32, #tpu.memory_space<vmem>>, %arg9: memref<8x4xf32, #tpu.memory_space<vmem>>, %arg10: memref<8x128xf32, #tpu.memory_space<vmem>>, %arg11: memref<8x32xf32, #tpu.memory_space<vmem>>) attributes {dimension_semantics = [], scalar_prefetch = 0 : i64, scratch_operands = 2 : i64, tpu.core_type = #tpu.core_type<tc>} {
    %c0 = arith.constant 0 : index
    %c0_0 = arith.constant 0 : index
    %0 = vector.load %arg0[%c0, %c0_0] : memref<8x16xf32, #tpu.memory_space<vmem>>, vector<8x16xf32>
    %c0_1 = arith.constant 0 : index
    %c0_2 = arith.constant 0 : index
    %1 = vector.load %arg1[%c0_1, %c0_2] : memref<16x32xf32, #tpu.memory_space<vmem>>, vector<16x32xf32>
    %cst = arith.constant dense<0.000000e+00> : vector<8x32xf32>
    %2 = tpu.matmul %0, %1, %cst {dimension_numbers = #tpu.dot_dimension_numbers<[1], [0], [0], [1], [0, 0, 1, 1], [], []>} : vector<8x16xf32>, vector<16x32xf32>, vector<8x32xf32> -> vector<8x32xf32>
    %c0_3 = arith.constant 0 : index
    %c0_4 = arith.constant 0 : index
    %3 = vector.load %arg2[%c0_3, %c0_4] : memref<1x32xf32, #tpu.memory_space<vmem>>, vector<1x32xf32>
    %4 = vector.broadcast %3 : vector<1x32xf32> to vector<8x32xf32>
    %5 = arith.addf %2, %4 : vector<8x32xf32>
    %cst_5 = arith.constant 0.000000e+00 : f32
    %6 = vector.broadcast %cst_5 : f32 to vector<8x32xf32>
    %7 = arith.maximumf %5, %6 : vector<8x32xf32>
    %8 = tpu.iota {dimensions = array<i32: 1>} : vector<1x128xi32>
    %c64_i32 = arith.constant 64 : i32
    %9 = vector.broadcast %c64_i32 : i32 to vector<1x128xi32>
    %10 = arith.cmpi sge, %8, %9 : vector<1x128xi32>
    %c96_i32 = arith.constant 96 : i32
    %11 = vector.broadcast %c96_i32 : i32 to vector<1x128xi32>
    %12 = arith.cmpi slt, %8, %11 : vector<1x128xi32>
    %13 = arith.andi %10, %12 : vector<1x128xi1>
    %cst_6 = arith.constant 2.000000e+00 : f32
    %cst_7 = arith.constant 1.000000e+00 : f32
    %14 = vector.broadcast %cst_6 : f32 to vector<1x128xf32>
    %15 = vector.broadcast %cst_7 : f32 to vector<1x128xf32>
    %16 = arith.select %13, %14, %15 : vector<1x128xi1>, vector<1x128xf32>
    %c0_8 = arith.constant 0 : index
    %c0_9 = arith.constant 0 : index
    %17 = vector.load %arg3[%c0_8, %c0_9] : memref<32x128xf32, #tpu.memory_space<vmem>>, vector<32x128xf32>
    %18 = vector.broadcast %16 : vector<1x128xf32> to vector<32x128xf32>
    %19 = arith.mulf %17, %18 : vector<32x128xf32>
    %c0_10 = arith.constant 0 : index
    %c0_11 = arith.constant 0 : index
    %20 = vector.load %arg5[%c0_10, %c0_11] : memref<32x128xf32, #tpu.memory_space<vmem>>, vector<32x128xf32>
    %21 = vector.broadcast %16 : vector<1x128xf32> to vector<32x128xf32>
    %22 = arith.mulf %20, %21 : vector<32x128xf32>
    %c0_12 = arith.constant 0 : index
    %c0_13 = arith.constant 0 : index
    %23 = vector.load %arg4[%c0_12, %c0_13] : memref<1x128xf32, #tpu.memory_space<vmem>>, vector<1x128xf32>
    %c0_14 = arith.constant 0 : index
    %c0_15 = arith.constant 0 : index
    %24 = vector.load %arg6[%c0_14, %c0_15] : memref<1x128xf32, #tpu.memory_space<vmem>>, vector<1x128xf32>
    %25 = arith.addf %23, %24 : vector<1x128xf32>
    %26 = arith.mulf %25, %16 : vector<1x128xf32>
    %cst_16 = arith.constant dense<0.000000e+00> : vector<8x128xf32>
    %27 = tpu.matmul %7, %19, %cst_16 {dimension_numbers = #tpu.dot_dimension_numbers<[1], [0], [0], [1], [0, 0, 1, 1], [], []>} : vector<8x32xf32>, vector<32x128xf32>, vector<8x128xf32> -> vector<8x128xf32>
    %28 = vector.broadcast %26 : vector<1x128xf32> to vector<8x128xf32>
    %29 = arith.addf %27, %28 : vector<8x128xf32>
    %c0_17 = arith.constant 0 : index
    %c0_18 = arith.constant 0 : index
    %30 = vector.load %arg10[%c0_17, %c0_18] : memref<8x128xf32, #tpu.memory_space<vmem>>, vector<8x128xf32>
    tpu.vector_store %arg10[%c0_17, %c0_18], %29 {strides = array<i32>} : memref<8x128xf32, #tpu.memory_space<vmem>>, vector<8x128xf32>,
    %cst_19 = arith.constant 0.000000e+00 : f32
    %31 = vector.broadcast %cst_19 : f32 to vector<1x32xf32>
    %cst_20 = arith.constant 0.000000e+00 : f32
    %32 = vector.broadcast %cst_20 : f32 to vector<1x32xf32>
    %c0_i32 = arith.constant 0 : i32
    %33 = arith.index_cast %c0_i32 : i32 to index
    %c0_21 = arith.constant 0 : index
    %34 = vector.load %arg10[%33, %c0_21] : memref<8x128xf32, #tpu.memory_space<vmem>>, vector<1x128xf32>
    %cst_22 = arith.constant dense<0.000000e+00> : vector<1x128xf32>
    %35 = tpu.matmul %31, %22, %cst_22 {dimension_numbers = #tpu.dot_dimension_numbers<[1], [0], [0], [1], [0, 0, 1, 1], [], []>} : vector<1x32xf32>, vector<32x128xf32>, vector<1x128xf32> -> vector<1x128xf32>
    %36 = arith.addf %34, %35 : vector<1x128xf32>
    %37 = arith.negf %36 : vector<1x128xf32>
    %38 = math.exp %37 : vector<1x128xf32>
    %cst_23 = arith.constant 1.000000e+00 : f32
    %39 = vector.broadcast %cst_23 : f32 to vector<1x128xf32>
    %40 = arith.addf %39, %38 : vector<1x128xf32>
    %41 = arith.divf %39, %40 : vector<1x128xf32>
    %42 = vector.extract_strided_slice %41 {offsets = [0, 0], sizes = [1, 32], strides = [1, 1]} : vector<1x128xf32> to vector<1x32xf32>
    %43 = vector.extract_strided_slice %41 {offsets = [0, 32], sizes = [1, 32], strides = [1, 1]} : vector<1x128xf32> to vector<1x32xf32>
    %44 = vector.extract_strided_slice %41 {offsets = [0, 64], sizes = [1, 32], strides = [1, 1]} : vector<1x128xf32> to vector<1x32xf32>
    %cst_24 = arith.constant 2.000000e+00 : f32
    %45 = vector.broadcast %cst_24 : f32 to vector<1x32xf32>
    %46 = arith.mulf %45, %44 : vector<1x32xf32>
    %cst_25 = arith.constant 1.000000e+00 : f32
    %47 = vector.broadcast %cst_25 : f32 to vector<1x32xf32>
    %48 = arith.subf %46, %47 : vector<1x32xf32>
    %49 = vector.extract_strided_slice %41 {offsets = [0, 96], sizes = [1, 32], strides = [1, 1]} : vector<1x128xf32> to vector<1x32xf32>
    %50 = arith.mulf %43, %32 : vector<1x32xf32>
    %51 = arith.mulf %42, %48 : vector<1x32xf32>
    %52 = arith.addf %50, %51 : vector<1x32xf32>
    %53 = math.tanh %52 : vector<1x32xf32>
    %54 = arith.mulf %49, %53 : vector<1x32xf32>
    %55 = arith.index_cast %c0_i32 : i32 to index
    %c0_26 = arith.constant 0 : index
    %56 = vector.load %arg11[%55, %c0_26] : memref<8x32xf32, #tpu.memory_space<vmem>>, vector<1x32xf32>
    tpu.vector_store %arg11[%55, %c0_26], %54 {strides = array<i32>} : memref<8x32xf32, #tpu.memory_space<vmem>>, vector<1x32xf32>,
    %c1_i32 = arith.constant 1 : i32
    %57 = arith.index_cast %c1_i32 : i32 to index
    %c0_27 = arith.constant 0 : index
    %58 = vector.load %arg10[%57, %c0_27] : memref<8x128xf32, #tpu.memory_space<vmem>>, vector<1x128xf32>
    %cst_28 = arith.constant dense<0.000000e+00> : vector<1x128xf32>
    %59 = tpu.matmul %54, %22, %cst_28 {dimension_numbers = #tpu.dot_dimension_numbers<[1], [0], [0], [1], [0, 0, 1, 1], [], []>} : vector<1x32xf32>, vector<32x128xf32>, vector<1x128xf32> -> vector<1x128xf32>
    %60 = arith.addf %58, %59 : vector<1x128xf32>
    %61 = arith.negf %60 : vector<1x128xf32>
    %62 = math.exp %61 : vector<1x128xf32>
    %cst_29 = arith.constant 1.000000e+00 : f32
    %63 = vector.broadcast %cst_29 : f32 to vector<1x128xf32>
    %64 = arith.addf %63, %62 : vector<1x128xf32>
    %65 = arith.divf %63, %64 : vector<1x128xf32>
    %66 = vector.extract_strided_slice %65 {offsets = [0, 0], sizes = [1, 32], strides = [1, 1]} : vector<1x128xf32> to vector<1x32xf32>
    %67 = vector.extract_strided_slice %65 {offsets = [0, 32], sizes = [1, 32], strides = [1, 1]} : vector<1x128xf32> to vector<1x32xf32>
    %68 = vector.extract_strided_slice %65 {offsets = [0, 64], sizes = [1, 32], strides = [1, 1]} : vector<1x128xf32> to vector<1x32xf32>
    %cst_30 = arith.constant 2.000000e+00 : f32
    %69 = vector.broadcast %cst_30 : f32 to vector<1x32xf32>
    %70 = arith.mulf %69, %68 : vector<1x32xf32>
    %cst_31 = arith.constant 1.000000e+00 : f32
    %71 = vector.broadcast %cst_31 : f32 to vector<1x32xf32>
    %72 = arith.subf %70, %71 : vector<1x32xf32>
    %73 = vector.extract_strided_slice %65 {offsets = [0, 96], sizes = [1, 32], strides = [1, 1]} : vector<1x128xf32> to vector<1x32xf32>
    %74 = arith.mulf %67, %52 : vector<1x32xf32>
    %75 = arith.mulf %66, %72 : vector<1x32xf32>
    %76 = arith.addf %74, %75 : vector<1x32xf32>
    %77 = math.tanh %76 : vector<1x32xf32>
    %78 = arith.mulf %73, %77 : vector<1x32xf32>
    %79 = arith.index_cast %c1_i32 : i32 to index
    %c0_32 = arith.constant 0 : index
    %80 = vector.load %arg11[%79, %c0_32] : memref<8x32xf32, #tpu.memory_space<vmem>>, vector<1x32xf32>
    tpu.vector_store %arg11[%79, %c0_32], %78 {strides = array<i32>} : memref<8x32xf32, #tpu.memory_space<vmem>>, vector<1x32xf32>,
    %c2_i32 = arith.constant 2 : i32
    %81 = arith.index_cast %c2_i32 : i32 to index
    %c0_33 = arith.constant 0 : index
    %82 = vector.load %arg10[%81, %c0_33] : memref<8x128xf32, #tpu.memory_space<vmem>>, vector<1x128xf32>
    %cst_34 = arith.constant dense<0.000000e+00> : vector<1x128xf32>
    %83 = tpu.matmul %78, %22, %cst_34 {dimension_numbers = #tpu.dot_dimension_numbers<[1], [0], [0], [1], [0, 0, 1, 1], [], []>} : vector<1x32xf32>, vector<32x128xf32>, vector<1x128xf32> -> vector<1x128xf32>
    %84 = arith.addf %82, %83 : vector<1x128xf32>
    %85 = arith.negf %84 : vector<1x128xf32>
    %86 = math.exp %85 : vector<1x128xf32>
    %cst_35 = arith.constant 1.000000e+00 : f32
    %87 = vector.broadcast %cst_35 : f32 to vector<1x128xf32>
    %88 = arith.addf %87, %86 : vector<1x128xf32>
    %89 = arith.divf %87, %88 : vector<1x128xf32>
    %90 = vector.extract_strided_slice %89 {offsets = [0, 0], sizes = [1, 32], strides = [1, 1]} : vector<1x128xf32> to vector<1x32xf32>
    %91 = vector.extract_strided_slice %89 {offsets = [0, 32], sizes = [1, 32], strides = [1, 1]} : vector<1x128xf32> to vector<1x32xf32>
    %92 = vector.extract_strided_slice %89 {offsets = [0, 64], sizes = [1, 32], strides = [1, 1]} : vector<1x128xf32> to vector<1x32xf32>
    %cst_36 = arith.constant 2.000000e+00 : f32
    %93 = vector.broadcast %cst_36 : f32 to vector<1x32xf32>
    %94 = arith.mulf %93, %92 : vector<1x32xf32>
    %cst_37 = arith.constant 1.000000e+00 : f32
    %95 = vector.broadcast %cst_37 : f32 to vector<1x32xf32>
    %96 = arith.subf %94, %95 : vector<1x32xf32>
    %97 = vector.extract_strided_slice %89 {offsets = [0, 96], sizes = [1, 32], strides = [1, 1]} : vector<1x128xf32> to vector<1x32xf32>
    %98 = arith.mulf %91, %76 : vector<1x32xf32>
    %99 = arith.mulf %90, %96 : vector<1x32xf32>
    %100 = arith.addf %98, %99 : vector<1x32xf32>
    %101 = math.tanh %100 : vector<1x32xf32>
    %102 = arith.mulf %97, %101 : vector<1x32xf32>
    %103 = arith.index_cast %c2_i32 : i32 to index
    %c0_38 = arith.constant 0 : index
    %104 = vector.load %arg11[%103, %c0_38] : memref<8x32xf32, #tpu.memory_space<vmem>>, vector<1x32xf32>
    tpu.vector_store %arg11[%103, %c0_38], %102 {strides = array<i32>} : memref<8x32xf32, #tpu.memory_space<vmem>>, vector<1x32xf32>,
    %c3_i32 = arith.constant 3 : i32
    %105 = arith.index_cast %c3_i32 : i32 to index
    %c0_39 = arith.constant 0 : index
    %106 = vector.load %arg10[%105, %c0_39] : memref<8x128xf32, #tpu.memory_space<vmem>>, vector<1x128xf32>
    %cst_40 = arith.constant dense<0.000000e+00> : vector<1x128xf32>
    %107 = tpu.matmul %102, %22, %cst_40 {dimension_numbers = #tpu.dot_dimension_numbers<[1], [0], [0], [1], [0, 0, 1, 1], [], []>} : vector<1x32xf32>, vector<32x128xf32>, vector<1x128xf32> -> vector<1x128xf32>
    %108 = arith.addf %106, %107 : vector<1x128xf32>
    %109 = arith.negf %108 : vector<1x128xf32>
    %110 = math.exp %109 : vector<1x128xf32>
    %cst_41 = arith.constant 1.000000e+00 : f32
    %111 = vector.broadcast %cst_41 : f32 to vector<1x128xf32>
    %112 = arith.addf %111, %110 : vector<1x128xf32>
    %113 = arith.divf %111, %112 : vector<1x128xf32>
    %114 = vector.extract_strided_slice %113 {offsets = [0, 0], sizes = [1, 32], strides = [1, 1]} : vector<1x128xf32> to vector<1x32xf32>
    %115 = vector.extract_strided_slice %113 {offsets = [0, 32], sizes = [1, 32], strides = [1, 1]} : vector<1x128xf32> to vector<1x32xf32>
    %116 = vector.extract_strided_slice %113 {offsets = [0, 64], sizes = [1, 32], strides = [1, 1]} : vector<1x128xf32> to vector<1x32xf32>
    %cst_42 = arith.constant 2.000000e+00 : f32
    %117 = vector.broadcast %cst_42 : f32 to vector<1x32xf32>
    %118 = arith.mulf %117, %116 : vector<1x32xf32>
    %cst_43 = arith.constant 1.000000e+00 : f32
    %119 = vector.broadcast %cst_43 : f32 to vector<1x32xf32>
    %120 = arith.subf %118, %119 : vector<1x32xf32>
    %121 = vector.extract_strided_slice %113 {offsets = [0, 96], sizes = [1, 32], strides = [1, 1]} : vector<1x128xf32> to vector<1x32xf32>
    %122 = arith.mulf %115, %100 : vector<1x32xf32>
    %123 = arith.mulf %114, %120 : vector<1x32xf32>
    %124 = arith.addf %122, %123 : vector<1x32xf32>
    %125 = math.tanh %124 : vector<1x32xf32>
    %126 = arith.mulf %121, %125 : vector<1x32xf32>
    %127 = arith.index_cast %c3_i32 : i32 to index
    %c0_44 = arith.constant 0 : index
    %128 = vector.load %arg11[%127, %c0_44] : memref<8x32xf32, #tpu.memory_space<vmem>>, vector<1x32xf32>
    tpu.vector_store %arg11[%127, %c0_44], %126 {strides = array<i32>} : memref<8x32xf32, #tpu.memory_space<vmem>>, vector<1x32xf32>,
    %c4_i32 = arith.constant 4 : i32
    %129 = arith.index_cast %c4_i32 : i32 to index
    %c0_45 = arith.constant 0 : index
    %130 = vector.load %arg10[%129, %c0_45] : memref<8x128xf32, #tpu.memory_space<vmem>>, vector<1x128xf32>
    %cst_46 = arith.constant dense<0.000000e+00> : vector<1x128xf32>
    %131 = tpu.matmul %126, %22, %cst_46 {dimension_numbers = #tpu.dot_dimension_numbers<[1], [0], [0], [1], [0, 0, 1, 1], [], []>} : vector<1x32xf32>, vector<32x128xf32>, vector<1x128xf32> -> vector<1x128xf32>
    %132 = arith.addf %130, %131 : vector<1x128xf32>
    %133 = arith.negf %132 : vector<1x128xf32>
    %134 = math.exp %133 : vector<1x128xf32>
    %cst_47 = arith.constant 1.000000e+00 : f32
    %135 = vector.broadcast %cst_47 : f32 to vector<1x128xf32>
    %136 = arith.addf %135, %134 : vector<1x128xf32>
    %137 = arith.divf %135, %136 : vector<1x128xf32>
    %138 = vector.extract_strided_slice %137 {offsets = [0, 0], sizes = [1, 32], strides = [1, 1]} : vector<1x128xf32> to vector<1x32xf32>
    %139 = vector.extract_strided_slice %137 {offsets = [0, 32], sizes = [1, 32], strides = [1, 1]} : vector<1x128xf32> to vector<1x32xf32>
    %140 = vector.extract_strided_slice %137 {offsets = [0, 64], sizes = [1, 32], strides = [1, 1]} : vector<1x128xf32> to vector<1x32xf32>
    %cst_48 = arith.constant 2.000000e+00 : f32
    %141 = vector.broadcast %cst_48 : f32 to vector<1x32xf32>
    %142 = arith.mulf %141, %140 : vector<1x32xf32>
    %cst_49 = arith.constant 1.000000e+00 : f32
    %143 = vector.broadcast %cst_49 : f32 to vector<1x32xf32>
    %144 = arith.subf %142, %143 : vector<1x32xf32>
    %145 = vector.extract_strided_slice %137 {offsets = [0, 96], sizes = [1, 32], strides = [1, 1]} : vector<1x128xf32> to vector<1x32xf32>
    %146 = arith.mulf %139, %124 : vector<1x32xf32>
    %147 = arith.mulf %138, %144 : vector<1x32xf32>
    %148 = arith.addf %146, %147 : vector<1x32xf32>
    %149 = math.tanh %148 : vector<1x32xf32>
    %150 = arith.mulf %145, %149 : vector<1x32xf32>
    %151 = arith.index_cast %c4_i32 : i32 to index
    %c0_50 = arith.constant 0 : index
    %152 = vector.load %arg11[%151, %c0_50] : memref<8x32xf32, #tpu.memory_space<vmem>>, vector<1x32xf32>
    tpu.vector_store %arg11[%151, %c0_50], %150 {strides = array<i32>} : memref<8x32xf32, #tpu.memory_space<vmem>>, vector<1x32xf32>,
    %c5_i32 = arith.constant 5 : i32
    %153 = arith.index_cast %c5_i32 : i32 to index
    %c0_51 = arith.constant 0 : index
    %154 = vector.load %arg10[%153, %c0_51] : memref<8x128xf32, #tpu.memory_space<vmem>>, vector<1x128xf32>
    %cst_52 = arith.constant dense<0.000000e+00> : vector<1x128xf32>
    %155 = tpu.matmul %150, %22, %cst_52 {dimension_numbers = #tpu.dot_dimension_numbers<[1], [0], [0], [1], [0, 0, 1, 1], [], []>} : vector<1x32xf32>, vector<32x128xf32>, vector<1x128xf32> -> vector<1x128xf32>
    %156 = arith.addf %154, %155 : vector<1x128xf32>
    %157 = arith.negf %156 : vector<1x128xf32>
    %158 = math.exp %157 : vector<1x128xf32>
    %cst_53 = arith.constant 1.000000e+00 : f32
    %159 = vector.broadcast %cst_53 : f32 to vector<1x128xf32>
    %160 = arith.addf %159, %158 : vector<1x128xf32>
    %161 = arith.divf %159, %160 : vector<1x128xf32>
    %162 = vector.extract_strided_slice %161 {offsets = [0, 0], sizes = [1, 32], strides = [1, 1]} : vector<1x128xf32> to vector<1x32xf32>
    %163 = vector.extract_strided_slice %161 {offsets = [0, 32], sizes = [1, 32], strides = [1, 1]} : vector<1x128xf32> to vector<1x32xf32>
    %164 = vector.extract_strided_slice %161 {offsets = [0, 64], sizes = [1, 32], strides = [1, 1]} : vector<1x128xf32> to vector<1x32xf32>
    %cst_54 = arith.constant 2.000000e+00 : f32
    %165 = vector.broadcast %cst_54 : f32 to vector<1x32xf32>
    %166 = arith.mulf %165, %164 : vector<1x32xf32>
    %cst_55 = arith.constant 1.000000e+00 : f32
    %167 = vector.broadcast %cst_55 : f32 to vector<1x32xf32>
    %168 = arith.subf %166, %167 : vector<1x32xf32>
    %169 = vector.extract_strided_slice %161 {offsets = [0, 96], sizes = [1, 32], strides = [1, 1]} : vector<1x128xf32> to vector<1x32xf32>
    %170 = arith.mulf %163, %148 : vector<1x32xf32>
    %171 = arith.mulf %162, %168 : vector<1x32xf32>
    %172 = arith.addf %170, %171 : vector<1x32xf32>
    %173 = math.tanh %172 : vector<1x32xf32>
    %174 = arith.mulf %169, %173 : vector<1x32xf32>
    %175 = arith.index_cast %c5_i32 : i32 to index
    %c0_56 = arith.constant 0 : index
    %176 = vector.load %arg11[%175, %c0_56] : memref<8x32xf32, #tpu.memory_space<vmem>>, vector<1x32xf32>
    tpu.vector_store %arg11[%175, %c0_56], %174 {strides = array<i32>} : memref<8x32xf32, #tpu.memory_space<vmem>>, vector<1x32xf32>,
    %c6_i32 = arith.constant 6 : i32
    %177 = arith.index_cast %c6_i32 : i32 to index
    %c0_57 = arith.constant 0 : index
    %178 = vector.load %arg10[%177, %c0_57] : memref<8x128xf32, #tpu.memory_space<vmem>>, vector<1x128xf32>
    %cst_58 = arith.constant dense<0.000000e+00> : vector<1x128xf32>
    %179 = tpu.matmul %174, %22, %cst_58 {dimension_numbers = #tpu.dot_dimension_numbers<[1], [0], [0], [1], [0, 0, 1, 1], [], []>} : vector<1x32xf32>, vector<32x128xf32>, vector<1x128xf32> -> vector<1x128xf32>
    %180 = arith.addf %178, %179 : vector<1x128xf32>
    %181 = arith.negf %180 : vector<1x128xf32>
    %182 = math.exp %181 : vector<1x128xf32>
    %cst_59 = arith.constant 1.000000e+00 : f32
    %183 = vector.broadcast %cst_59 : f32 to vector<1x128xf32>
    %184 = arith.addf %183, %182 : vector<1x128xf32>
    %185 = arith.divf %183, %184 : vector<1x128xf32>
    %186 = vector.extract_strided_slice %185 {offsets = [0, 0], sizes = [1, 32], strides = [1, 1]} : vector<1x128xf32> to vector<1x32xf32>
    %187 = vector.extract_strided_slice %185 {offsets = [0, 32], sizes = [1, 32], strides = [1, 1]} : vector<1x128xf32> to vector<1x32xf32>
    %188 = vector.extract_strided_slice %185 {offsets = [0, 64], sizes = [1, 32], strides = [1, 1]} : vector<1x128xf32> to vector<1x32xf32>
    %cst_60 = arith.constant 2.000000e+00 : f32
    %189 = vector.broadcast %cst_60 : f32 to vector<1x32xf32>
    %190 = arith.mulf %189, %188 : vector<1x32xf32>
    %cst_61 = arith.constant 1.000000e+00 : f32
    %191 = vector.broadcast %cst_61 : f32 to vector<1x32xf32>
    %192 = arith.subf %190, %191 : vector<1x32xf32>
    %193 = vector.extract_strided_slice %185 {offsets = [0, 96], sizes = [1, 32], strides = [1, 1]} : vector<1x128xf32> to vector<1x32xf32>
    %194 = arith.mulf %187, %172 : vector<1x32xf32>
    %195 = arith.mulf %186, %192 : vector<1x32xf32>
    %196 = arith.addf %194, %195 : vector<1x32xf32>
    %197 = math.tanh %196 : vector<1x32xf32>
    %198 = arith.mulf %193, %197 : vector<1x32xf32>
    %199 = arith.index_cast %c6_i32 : i32 to index
    %c0_62 = arith.constant 0 : index
    %200 = vector.load %arg11[%199, %c0_62] : memref<8x32xf32, #tpu.memory_space<vmem>>, vector<1x32xf32>
    tpu.vector_store %arg11[%199, %c0_62], %198 {strides = array<i32>} : memref<8x32xf32, #tpu.memory_space<vmem>>, vector<1x32xf32>,
    %c7_i32 = arith.constant 7 : i32
    %201 = arith.index_cast %c7_i32 : i32 to index
    %c0_63 = arith.constant 0 : index
    %202 = vector.load %arg10[%201, %c0_63] : memref<8x128xf32, #tpu.memory_space<vmem>>, vector<1x128xf32>
    %cst_64 = arith.constant dense<0.000000e+00> : vector<1x128xf32>
    %203 = tpu.matmul %198, %22, %cst_64 {dimension_numbers = #tpu.dot_dimension_numbers<[1], [0], [0], [1], [0, 0, 1, 1], [], []>} : vector<1x32xf32>, vector<32x128xf32>, vector<1x128xf32> -> vector<1x128xf32>
    %204 = arith.addf %202, %203 : vector<1x128xf32>
    %205 = arith.negf %204 : vector<1x128xf32>
    %206 = math.exp %205 : vector<1x128xf32>
    %cst_65 = arith.constant 1.000000e+00 : f32
    %207 = vector.broadcast %cst_65 : f32 to vector<1x128xf32>
    %208 = arith.addf %207, %206 : vector<1x128xf32>
    %209 = arith.divf %207, %208 : vector<1x128xf32>
    %210 = vector.extract_strided_slice %209 {offsets = [0, 0], sizes = [1, 32], strides = [1, 1]} : vector<1x128xf32> to vector<1x32xf32>
    %211 = vector.extract_strided_slice %209 {offsets = [0, 32], sizes = [1, 32], strides = [1, 1]} : vector<1x128xf32> to vector<1x32xf32>
    %212 = vector.extract_strided_slice %209 {offsets = [0, 64], sizes = [1, 32], strides = [1, 1]} : vector<1x128xf32> to vector<1x32xf32>
    %cst_66 = arith.constant 2.000000e+00 : f32
    %213 = vector.broadcast %cst_66 : f32 to vector<1x32xf32>
    %214 = arith.mulf %213, %212 : vector<1x32xf32>
    %cst_67 = arith.constant 1.000000e+00 : f32
    %215 = vector.broadcast %cst_67 : f32 to vector<1x32xf32>
    %216 = arith.subf %214, %215 : vector<1x32xf32>
    %217 = vector.extract_strided_slice %209 {offsets = [0, 96], sizes = [1, 32], strides = [1, 1]} : vector<1x128xf32> to vector<1x32xf32>
    %218 = arith.mulf %211, %196 : vector<1x32xf32>
    %219 = arith.mulf %210, %216 : vector<1x32xf32>
    %220 = arith.addf %218, %219 : vector<1x32xf32>
    %221 = math.tanh %220 : vector<1x32xf32>
    %222 = arith.mulf %217, %221 : vector<1x32xf32>
    %223 = arith.index_cast %c7_i32 : i32 to index
    %c0_68 = arith.constant 0 : index
    %224 = vector.load %arg11[%223, %c0_68] : memref<8x32xf32, #tpu.memory_space<vmem>>, vector<1x32xf32>
    tpu.vector_store %arg11[%223, %c0_68], %222 {strides = array<i32>} : memref<8x32xf32, #tpu.memory_space<vmem>>, vector<1x32xf32>,
    %c8_i32 = arith.constant 8 : i32
    %c0_69 = arith.constant 0 : index
    %c0_70 = arith.constant 0 : index
    %225 = vector.load %arg11[%c0_69, %c0_70] : memref<8x32xf32, #tpu.memory_space<vmem>>, vector<8x32xf32>
    %c0_71 = arith.constant 0 : index
    %c0_72 = arith.constant 0 : index
    %226 = vector.load %arg7[%c0_71, %c0_72] : memref<32x4xf32, #tpu.memory_space<vmem>>, vector<32x4xf32>
    %cst_73 = arith.constant dense<0.000000e+00> : vector<8x4xf32>
    %227 = tpu.matmul %225, %226, %cst_73 {dimension_numbers = #tpu.dot_dimension_numbers<[1], [0], [0], [1], [0, 0, 1, 1], [], []>} : vector<8x32xf32>, vector<32x4xf32>, vector<8x4xf32> -> vector<8x4xf32>
    %c0_74 = arith.constant 0 : index
    %c0_75 = arith.constant 0 : index
    %228 = vector.load %arg8[%c0_74, %c0_75] : memref<1x4xf32, #tpu.memory_space<vmem>>, vector<1x4xf32>
    %229 = vector.broadcast %228 : vector<1x4xf32> to vector<8x4xf32>
    %230 = arith.addf %227, %229 : vector<8x4xf32>
    %c0_76 = arith.constant 0 : index
    %c0_77 = arith.constant 0 : index
    %231 = vector.load %arg9[%c0_76, %c0_77] : memref<8x4xf32, #tpu.memory_space<vmem>>, vector<8x4xf32>
    tpu.vector_store %arg9[%c0_76, %c0_77], %230 {strides = array<i32>} : memref<8x4xf32, #tpu.memory_space<vmem>>, vector<8x4xf32>,
    return
  }
}

</mosaic_0001>

<bundles_post_ra>
// kernel: tpu_custom_call.1
= control target key start
LH: loop header
LB: loop body
LE: loop exit
PB: predicated region body
PF: predicated region fallthrough
CT: control target
= control target key end

     0   :  { %14 = vsyncpa [#allocation5], 0  ;;  %s1787_s0 = inlined_call_operand.vmem [shape: f32[8,16], index: 0, kind: input, shape index: {}]   ;;  %s1788_s1 = inlined_call_operand.hbm [shape: f32[16,32], index: 1, kind: input, shape index: {}]   ;;  %s1789_s2 = inlined_call_operand.vmem [shape: f32[1,32], index: 2, kind: input, shape index: {}]   ;;  %s1790_s3 = inlined_call_operand.vmem [shape: f32[32,128], index: 3, kind: input, shape index: {}]   ;;  %s1791_s4 = inlined_call_operand.vmem [shape: f32[1,128], index: 4, kind: input, shape index: {}]   ;;  %s1792_s5 = inlined_call_operand.hbm [shape: f32[32,128], index: 5, kind: input, shape index: {}]   ;;  %s1793_s6 = inlined_call_operand.vmem [shape: f32[1,128], index: 6, kind: input, shape index: {}]   ;;  %s1794_s7 = inlined_call_operand.vmem [shape: f32[32,4], index: 7, kind: input, shape index: {}]   ;;  %s1795_s8 = inlined_call_operand.vmem [shape: f32[1,4], index: 8, kind: input, shape index: {}]   ;;  %s1796_s9 = inlined_call_operand.vmem [shape: f32[8,4], index: 9, kind: output, shape index: {}]  }
   0x1   :  { %15 = vsyncpa [#allocation7], 0  ;;  %s1546_s30 = smov [#allocation4]   ;;  %s1498_s13 = scalar_lea.hbm %s1788_s1, 256 }
   0x2   :  { %s23_s10 = sshll.u32 %s1546_s30, 4  ;;  %p1499_p0 = scmp.ne.s32.totalorder %s1788_s1, %s1498_s13  ;;  %s24_s10 = int_to_ptr.vmem [resolvable:$true] %s23_s10 }
   0x3   :  { %p1502_p1 = scmp.lt.u32.totalorder %s1498_s13, %s1788_s1 }
   0x5   :  { %p1504_p2 = pnand %p1502_p1, %p1499_p0 }
   0x7   :  { %1507 = shalt.err (!%p1504_p2)
}
   0x8   :  { %s1508_s18 = scalar_lea.vmem %s24_s10, 256  ;;  %p1513_p4 = scmp.lt.s32.totalorder %s24_s10, %s24_s10 }
   0x9   :  { %p1509_p3 = scmp.ne.s32.totalorder %s24_s10, %s1508_s18  ;;  %p1514_p5 = scmp.lt.s32.totalorder %s1508_s18, %s1508_s18 }
   0xb   :  { %p1515_p6 = por %p1514_p5, %p1513_p4 }
   0xd   :  { %p1516_p7 = pnand %p1515_p6, %p1509_p3 }
   0xf   :  { %1519 = shalt.err (!%p1516_p7)
}
  0x10   :  { %s1547_s19 = smov 128   ;;  %s1548_s20 = smov 8  }
  0x11   :  { %29 = dma.hbm_to_vmem [thread:$0]  %s1788_s1, 256, %s24_s10, [#allocation5], %s1547_s19, %s1547_s19, %s1548_s20  }
  0x12   :  { %s1549_s23 = smov [#allocation6]   ;;  %s1520_s27 = scalar_lea.hbm %s1792_s5, 512 }
  0x13   :  { %s41_s24 = sshll.u32 %s1549_s23, 4  ;;  %p1521_p8 = scmp.ne.s32.totalorder %s1792_s5, %s1520_s27  ;;  %s42_s24 = int_to_ptr.vmem [resolvable:$true] %s41_s24 }
  0x14   :  { %p1524_p9 = scmp.lt.u32.totalorder %s1520_s27, %s1792_s5 }
  0x16   :  { %p1526_p10 = pnand %p1524_p9, %p1521_p8 }
  0x18   :  { %1529 = shalt.err (!%p1526_p10)
}
  0x19   :  { %s1530_s12 = scalar_lea.vmem %s42_s24, 512  ;;  %p1535_p12 = scmp.lt.s32.totalorder %s42_s24, %s42_s24 }
  0x1a   :  { %p1531_p11 = scmp.ne.s32.totalorder %s42_s24, %s1530_s12  ;;  %p1536_p13 = scmp.lt.s32.totalorder %s1530_s12, %s1530_s12 }
  0x1c   :  { %p1537_p0 = por %p1536_p13, %p1535_p12 }
  0x1e   :  { %p1538_p1 = pnand %p1537_p0, %p1531_p11 }
  0x20   :  { %1541 = shalt.err (!%p1538_p1)
}
  0x21   :  { %47 = dma.hbm_to_vmem [thread:$0]  %s1792_s5, 512, %s42_s24, [#allocation7], %s1547_s19, %s1547_s19, %s1548_s20  }
  0x22   :  { %1542 = dma.done.wait [#allocation5], 256  }
  0x23   :  { %1543 = vsyncadd [#allocation5], 4294967040 }
  0x24   :  { %1544 = dma.done.wait [#allocation7], 512  }
  0x25   :  { %1545 = vsyncadd [#allocation7], 4294966784  ;;  %v1550_v0 = vmov 0.0|0.0   ;;  %vm1551_vm0 = vmmov 0   ;;  %v1552_v1 = vmov 0.0   ;;  %v145_v2 = vlaneseq  ;;  %v61_v4 = vld [vmem:[#allocation4] sm:$0xff] }
  0x26   :  { %1377 = vmatprep.subr.bf16.mxu0 %v1550_v0  ;;  %1264 = vmatprep.mubr.msk.f32.mxu0 %vm1551_vm0, %v1552_v1  ;;  %v62_v5 = vld [vmem:[#allocation4 + $0x8] sm:$0xff]  ;;  %v1553_v6 = vmov 1.0   ;;  %v151_v9 = vld [vmem:[%s1790_s3] sm:$0xff]  ;;  %v152_v10 = vld [vmem:[%s1790_s3 + $0x8] sm:$0xff]  ;;  %vm70_vm4 = vcmask 130048   ;;  %vm177_vm5 = vcmask 261120  }
  0x27   :  { %1380 = vmatprep.subr.bf16.mxu1 %v1550_v0  ;;  %1275 = vmatprep.mubr.msk.f32.mxu1 %vm1551_vm0, %v1552_v1  ;;  %v146_v3 = vand.u32 127, %v145_v2  ;;  %v1378_v8 = vpack.c.bf16 %v62_v5, %v61_v4  ;;  %v60_v13 = vld [vmem:[%s1787_s0] sm:$0xff]  ;;  %v153_v15 = vld [vmem:[%s1790_s3 + $0x10] sm:$0xff]  ;;  %v154_v16 = vld [vmem:[%s1790_s3 + $0x18] sm:$0xff]  ;;  %v173_v40 = vshrl.u32 %v145_v2, 7  ;;  %vm356_vm6 = vcmask 253952  }
  0x28   :  { %v159_v20 = vld [vmem:[#allocation6] sm:$0xff]  ;;  %v160_v21 = vld [vmem:[#allocation6 + $0x8] sm:$0xff]  ;;  %v161_v25 = vld [vmem:[#allocation6 + $0x10] sm:$0xff]  ;;  %vm1171_vm7 = vcmask 31744  }
  0x29   :  { %vm147_vm1 = vcmp.ge.s32.totalorder %v146_v3, 64  ;;  %vm148_vm2 = vcmp.lt.s32.totalorder %v146_v3, 96  ;;  %1379 = vmatpush3.bf16.msra.mxu0 %v1378_v8  ;;  %v162_v26 = vld [vmem:[#allocation6 + $0x18] sm:$0xff]  ;;  %v1179_v30 = vld [vmem:[%s1789_s2] ss:$0 sm:$0xff]  ;;  %v174_v42 = vsub.s32 0, %v173_v40 }
  0x2a   :  { %vm149_vm3 = vmand %vm147_vm1, %vm148_vm2  ;;  %1386 = vmatprep.subr.bf16.mxu0 %v1550_v0  ;;  %v167_v37 = vld [vmem:[%s1791_s4] sm:$0x1]  ;;  %s1554_s4 = smov 64  }
  0x2b   :  { %v150_v7 = vsel %vm149_vm3, 2.0, %v1553_v6  ;;  %v168_v38 = vld [vmem:[%s1793_s6] sm:$0x1]  ;;  %s1555_s6 = smov 32  }
  0x2c   :  { %v155_v11 = vmul.f32 %v151_v9, %v150_v7  ;;  %v156_v12 = vmul.f32 %v152_v10, %v150_v7  ;;  %1265 = vmatmul.mubr.msk.f32.vlgmr.msra.gmra.mrb[0].mxu0 %vm70_vm4, %v60_v13  ;;  %v157_v17 = vmul.f32 %v153_v15, %v150_v7  ;;  %v158_v18 = vmul.f32 %v154_v16, %v150_v7 }
  0x2d   :  { %1286 = vmatprep.mubr.msk.f32.mxu0 %vm1551_vm0, %v1552_v1  ;;  %v163_v22 = vmul.f32 %v159_v20, %v150_v7  ;;  %v164_v23 = vmul.f32 %v160_v21, %v150_v7  ;;  %v165_v27 = vmul.f32 %v161_v25, %v150_v7  ;;  %v166_v28 = vmul.f32 %v162_v26, %v150_v7 }
  0x2e   :  { %v1381_v14 = vpack.c.bf16 %v156_v12, %v155_v11  ;;  %v1384_v19 = vpack.c.bf16 %v158_v18, %v157_v17  ;;  %v169_v39 = vadd.f32 %v168_v38, %v167_v37 }
  0x2f   :  { %v1657_v24 = vpack.c.bf16 %v164_v23, %v163_v22  ;;  %v1661_v29 = vpack.c.bf16 %v166_v28, %v165_v27 }
  0x30   :  { %1382 = vmatpush3.bf16.msra.mxu1 %v1381_v14  ;;  %v170_v41 = vmul.f32 %v169_v39, %v150_v7 }
  0x31   :  { %1383 = vmatprep.subr.bf16.mxu1 %v1550_v0  ;;  %1388 = vmatpush3.bf16.msra.mxu0 %v1657_v24 }
  0x32   :  { %1389 = vmatprep.subr.bf16.mxu0 %v1550_v0  ;;  %v175_v43 = vrot.slane %v170_v41, %v174_v42 }
  0x34   :  { %1385 = vmatpush3.bf16.msra.mxu1 %v1384_v19 }
  0x35   :  { %1392 = vmatprep.subr.bf16.mxu1 %v1550_v0  ;;  %1391 = vmatpush3.bf16.msra.mxu0 %v1661_v29 }
  0x36   :  { %1398 = vmatprep.subr.bf16.mxu0 %v1550_v0 }
  0x38   :  { %1287 = vmatmul.mubr.f32.vlgmr.msra.gmra.mrb[2].mxu0 %v1552_v1 }
  0x39   :  { %1400 = vmatpush3.bf16.msra.mxu0 %v1657_v24  ;;  %1308 = vmatprep.mubr.msk.f32.mxu0 %vm1551_vm0, %v1552_v1 }
  0x3a   :  { %1401 = vmatprep.subr.bf16.mxu0 %v1550_v0 }
  0x3d   :  { %1403 = vmatpush3.bf16.msra.mxu0 %v1661_v29 }
  0x3e   :  { %1410 = vmatprep.subr.bf16.mxu0 %v1550_v0 }
  0xff   :  { %v140_v31 = vpop.f32.mrb[0].mxu0 }
 0x100   :  { %v141_v32 = vadd.f32 %v1179_v30, %v140_v31  ;;  %v1266_v33 = vpop.f32.mrb[1].mxu0 }
 0x102   :  { %v144_v34 = vmax.f32 %v141_v32, 0.0 }
 0x104   :  { %1276 = vmatmul.mubr.msk.f32.vlgmr.msra.gmra.mrb[0].mxu1 %vm177_vm5, %v144_v34 }
 0x105   :  { %1394 = vmatpush3.bf16.msra.mxu1 %v1657_v24  ;;  %1297 = vmatprep.mubr.msk.f32.mxu1 %vm1551_vm0, %v1552_v1 }
 0x106   :  { %1395 = vmatprep.subr.bf16.mxu1 %v1550_v0 }
 0x109   :  { %1397 = vmatpush3.bf16.msra.mxu1 %v1661_v29 }
 0x10a   :  { %1404 = vmatprep.subr.bf16.mxu1 %v1550_v0 }
 0x10b   :  { %v322_v35 = vpop.f32.mrb[2].mxu0 }
 0x10c   :  { %v1288_v36 = vpop.f32.mrb[3].mxu0 }
 0x1d7   :  { %v247_v44 = vpop.f32.mrb[0].mxu1 }
 0x1d8   :  { %v248_v45 = vadd.f32 %v247_v44, %v175_v43  ;;  %v1277_v46 = vpop.f32.mrb[1].mxu1 }
 0x1da   :  { %251 = vst [vmem:[#allocation2] sm:$0xff] %v248_v45 }
 0x1e1   :  { %v252_v47 = vld [vmem:[#allocation2] sm:$0x1]  ;;  %v358_v2 = vld [vmem:[#allocation2 + $0x1] sm:$0x1]  ;;  %v462_v21 = vld [vmem:[#allocation2 + $0x2] sm:$0x1] }
 0x1e2   :  { %v326_v48 = vadd.f32 %v322_v35, %v252_v47  ;;  %v566_v42 = vld [vmem:[#allocation2 + $0x3] sm:$0x1] }
 0x1e4   :  { %v1182_v49 = vmul.f32 -1.442695, %v326_v48 }
 0x1e6   :  { %1450 = vpow2.f32 %v1182_v49 }
 0x1f0   :  { %v1451_v50 = vpop.eup %1450 }
 0x1f1   :  { %v330_v51 = vadd.f32 1.0, %v1451_v50 }
 0x1f3   :  { %1452 = vrcp.f32 %v330_v51 }
 0x1fd   :  { %v1453_v52 = vpop.eup %1452 }
 0x1fe   :  { %v333_v53 = vmul.f32 2.0, %v1453_v52  ;;  %v335_v57 = vmul.f32 0.0, %v1453_v52 }
 0x200   :  { %v1183_v54 = vadd.f32 -1.0, %v333_v53 }
 0x202   :  { %337 = vrot.lane.b32.xlu0 %v1183_v54, %s1554_s4 }
 0x274   :  { %v338_v55 = vpop.permute.xlu0 %337 }
 0x275   :  { %v340_v56 = vmul.f32 %v1453_v52, %v338_v55 }
 0x277   :  { %342 = vrot.lane.b32.xlu0 %v340_v56, %s1555_s6 }
 0x2e9   :  { %v343_v58 = vpop.permute.xlu0 %342 }
 0x2ea   :  { %v345_v59 = vadd.f32 %v343_v58, %v335_v57 }
 0x2ec   :  { %1454 = vtanh.f32 %v345_v59 }
 0x2f6   :  { %v1455_v60 = vpop.eup %1454 }
 0x2f7   :  { %348 = vrot.lane.b32.xlu1 %v1455_v60, %s1554_s4 }
 0x369   :  { %v349_v61 = vpop.permute.xlu1 %348 }
 0x36a   :  { %v351_v62 = vmul.f32 %v1453_v52, %v349_v61  ;;  %v670_v61 = vld [vmem:[#allocation2 + $0x4] sm:$0x1] }
 0x36c   :  { %353 = vrot.lane.b32.xlu1 %v351_v62, %s1555_s6 }
 0x3de   :  { %v354_v63 = vpop.permute.xlu1 %353 }
 0x3df   :  { %357 = vst.msk [vmem:[#allocation3] sm:$0x1] %vm356_vm6, %v354_v63  ;;  %1298 = vmatmul.mubr.msk.f32.vlgmr.msra.gmra.mrb[2].mxu1 %vm177_vm5, %v354_v63 }
 0x3e0   :  { %1406 = vmatpush3.bf16.msra.mxu1 %v1657_v24  ;;  %1319 = vmatprep.mubr.msk.f32.mxu1 %vm1551_vm0, %v1552_v1 }
 0x3e1   :  { %1407 = vmatprep.subr.bf16.mxu1 %v1550_v0 }
 0x3e4   :  { %1409 = vmatpush3.bf16.msra.mxu1 %v1661_v29 }
 0x3e5   :  { %1416 = vmatprep.subr.bf16.mxu1 %v1550_v0 }
 0x4b2   :  { %v427_v3 = vpop.f32.mrb[2].mxu1 }
 0x4b3   :  { %v431_v4 = vadd.f32 %v427_v3, %v358_v2  ;;  %v1299_v5 = vpop.f32.mrb[3].mxu1 }
 0x4b5   :  { %v1185_v6 = vmul.f32 -1.442695, %v431_v4 }
 0x4b7   :  { %1456 = vpow2.f32 %v1185_v6 }
 0x4c1   :  { %v1457_v7 = vpop.eup %1456 }
 0x4c2   :  { %v435_v8 = vadd.f32 1.0, %v1457_v7 }
 0x4c4   :  { %1458 = vrcp.f32 %v435_v8 }
 0x4ce   :  { %v1459_v9 = vpop.eup %1458 }
 0x4cf   :  { %v438_v10 = vmul.f32 2.0, %v1459_v9  ;;  %v440_v14 = vmul.f32 %v1459_v9, %v345_v59 }
 0x4d1   :  { %v1186_v11 = vadd.f32 -1.0, %v438_v10 }
 0x4d3   :  { %442 = vrot.lane.b32.xlu0 %v1186_v11, %s1554_s4 }
 0x545   :  { %v443_v12 = vpop.permute.xlu0 %442 }
 0x546   :  { %v445_v13 = vmul.f32 %v1459_v9, %v443_v12 }
 0x548   :  { %447 = vrot.lane.b32.xlu1 %v445_v13, %s1555_s6 }
 0x5ba   :  { %v448_v15 = vpop.permute.xlu1 %447 }
 0x5bb   :  { %v450_v16 = vadd.f32 %v448_v15, %v440_v14 }
 0x5bd   :  { %1460 = vtanh.f32 %v450_v16 }
 0x5c7   :  { %v1461_v17 = vpop.eup %1460 }
 0x5c8   :  { %453 = vrot.lane.b32.xlu0 %v1461_v17, %s1554_s4 }
 0x63a   :  { %v454_v18 = vpop.permute.xlu0 %453 }
 0x63b   :  { %v456_v19 = vmul.f32 %v1459_v9, %v454_v18  ;;  %v774_v18 = vld [vmem:[#allocation2 + $0x5] sm:$0x1] }
 0x63d   :  { %458 = vrot.lane.b32.xlu1 %v456_v19, %s1555_s6 }
 0x6af   :  { %v459_v20 = vpop.permute.xlu1 %458 }
 0x6b0   :  { %461 = vst.msk [vmem:[#allocation3 + $0x1] sm:$0x1] %vm356_vm6, %v459_v20  ;;  %1309 = vmatmul.mubr.msk.f32.vlgmr.msra.gmra.mrb[4].mxu0 %vm177_vm5, %v459_v20 }
 0x6b1   :  { %1412 = vmatpush3.bf16.msra.mxu0 %v1657_v24  ;;  %1330 = vmatprep.mubr.msk.f32.mxu0 %vm1551_vm0, %v1552_v1 }
 0x6b2   :  { %1413 = vmatprep.subr.bf16.mxu0 %v1550_v0 }
 0x6b5   :  { %1415 = vmatpush3.bf16.msra.mxu0 %v1661_v29 }
 0x6b6   :  { %1422 = vmatprep.subr.bf16.mxu0 %v1550_v0 }
 0x783   :  { %v531_v22 = vpop.f32.mrb[4].mxu0 }
 0x784   :  { %v535_v23 = vadd.f32 %v531_v22, %v462_v21  ;;  %v1310_v25 = vpop.f32.mrb[5].mxu0 }
 0x786   :  { %v1188_v26 = vmul.f32 -1.442695, %v535_v23 }
 0x788   :  { %1462 = vpow2.f32 %v1188_v26 }
 0x792   :  { %v1463_v27 = vpop.eup %1462 }
 0x793   :  { %v539_v28 = vadd.f32 1.0, %v1463_v27 }
 0x795   :  { %1464 = vrcp.f32 %v539_v28 }
 0x79f   :  { %v1465_v30 = vpop.eup %1464 }
 0x7a0   :  { %v542_v31 = vmul.f32 2.0, %v1465_v30  ;;  %v544_v35 = vmul.f32 %v1465_v30, %v450_v16 }
 0x7a2   :  { %v1189_v32 = vadd.f32 -1.0, %v542_v31 }
 0x7a4   :  { %546 = vrot.lane.b32.xlu0 %v1189_v32, %s1554_s4 }
 0x816   :  { %v547_v33 = vpop.permute.xlu0 %546 }
 0x817   :  { %v549_v34 = vmul.f32 %v1465_v30, %v547_v33 }
 0x819   :  { %551 = vrot.lane.b32.xlu1 %v549_v34, %s1555_s6 }
 0x88b   :  { %v552_v36 = vpop.permute.xlu1 %551 }
 0x88c   :  { %v554_v37 = vadd.f32 %v552_v36, %v544_v35 }
 0x88e   :  { %1466 = vtanh.f32 %v554_v37 }
 0x898   :  { %v1467_v38 = vpop.eup %1466 }
 0x899   :  { %557 = vrot.lane.b32.xlu0 %v1467_v38, %s1554_s4 }
 0x90b   :  { %v558_v39 = vpop.permute.xlu0 %557 }
 0x90c   :  { %v560_v40 = vmul.f32 %v1465_v30, %v558_v39 }
 0x90e   :  { %562 = vrot.lane.b32.xlu1 %v560_v40, %s1555_s6 }
 0x980   :  { %v563_v41 = vpop.permute.xlu1 %562 }
 0x981   :  { %565 = vst.msk [vmem:[#allocation3 + $0x2] sm:$0x1] %vm356_vm6, %v563_v41  ;;  %1320 = vmatmul.mubr.msk.f32.vlgmr.msra.gmra.mrb[4].mxu1 %vm177_vm5, %v563_v41 }
 0x982   :  { %1418 = vmatpush3.bf16.msra.mxu1 %v1657_v24  ;;  %1341 = vmatprep.mubr.msk.f32.mxu1 %vm1551_vm0, %v1552_v1 }
 0x983   :  { %1419 = vmatprep.subr.bf16.mxu1 %v1550_v0 }
 0x986   :  { %1421 = vmatpush3.bf16.msra.mxu1 %v1661_v29 }
 0x987   :  { %1428 = vmatprep.subr.bf16.mxu1 %v1550_v0 }
 0xa54   :  { %v635_v43 = vpop.f32.mrb[4].mxu1 }
 0xa55   :  { %v639_v44 = vadd.f32 %v635_v43, %v566_v42  ;;  %v1321_v45 = vpop.f32.mrb[5].mxu1 }
 0xa57   :  { %v1191_v46 = vmul.f32 -1.442695, %v639_v44 }
 0xa59   :  { %1468 = vpow2.f32 %v1191_v46 }
 0xa63   :  { %v1469_v47 = vpop.eup %1468 }
 0xa64   :  { %v643_v48 = vadd.f32 1.0, %v1469_v47 }
 0xa66   :  { %1470 = vrcp.f32 %v643_v48 }
 0xa70   :  { %v1471_v49 = vpop.eup %1470 }
 0xa71   :  { %v646_v50 = vmul.f32 2.0, %v1471_v49  ;;  %v648_v54 = vmul.f32 %v1471_v49, %v554_v37  ;;  %v878_v37 = vld [vmem:[#allocation2 + $0x6] sm:$0x1] }
 0xa73   :  { %v1192_v51 = vadd.f32 -1.0, %v646_v50 }
 0xa75   :  { %650 = vrot.lane.b32.xlu0 %v1192_v51, %s1554_s4 }
 0xae7   :  { %v651_v52 = vpop.permute.xlu0 %650 }
 0xae8   :  { %v653_v53 = vmul.f32 %v1471_v49, %v651_v52 }
 0xaea   :  { %655 = vrot.lane.b32.xlu1 %v653_v53, %s1555_s6 }
 0xb5c   :  { %v656_v55 = vpop.permute.xlu1 %655 }
 0xb5d   :  { %v658_v56 = vadd.f32 %v656_v55, %v648_v54  ;;  %v982_v55 = vld [vmem:[#allocation2 + $0x7] sm:$0x1] }
 0xb5f   :  { %1472 = vtanh.f32 %v658_v56 }
 0xb69   :  { %v1473_v57 = vpop.eup %1472 }
 0xb6a   :  { %661 = vrot.lane.b32.xlu0 %v1473_v57, %s1554_s4 }
 0xbdc   :  { %v662_v58 = vpop.permute.xlu0 %661 }
 0xbdd   :  { %v664_v59 = vmul.f32 %v1471_v49, %v662_v58 }
 0xbdf   :  { %666 = vrot.lane.b32.xlu1 %v664_v59, %s1555_s6 }
 0xc51   :  { %v667_v60 = vpop.permute.xlu1 %666 }
 0xc52   :  { %669 = vst.msk [vmem:[#allocation3 + $0x3] sm:$0x1] %vm356_vm6, %v667_v60  ;;  %1331 = vmatmul.mubr.msk.f32.vlgmr.msra.gmra.mrb[6].mxu0 %vm177_vm5, %v667_v60 }
 0xc53   :  { %1424 = vmatpush3.bf16.msra.mxu0 %v1657_v24  ;;  %1352 = vmatprep.mubr.msk.f32.mxu0 %vm1551_vm0, %v1552_v1 }
 0xc54   :  { %1425 = vmatprep.subr.bf16.mxu0 %v1550_v0 }
 0xc57   :  { %1427 = vmatpush3.bf16.msra.mxu0 %v1661_v29 }
 0xc58   :  { %1434 = vmatprep.subr.bf16.mxu0 %v1550_v0 }
 0xd25   :  { %v739_v62 = vpop.f32.mrb[6].mxu0 }
 0xd26   :  { %v743_v63 = vadd.f32 %v739_v62, %v670_v61  ;;  %v1332_v2 = vpop.f32.mrb[7].mxu0 }
 0xd28   :  { %v1194_v3 = vmul.f32 -1.442695, %v743_v63 }
 0xd2a   :  { %1474 = vpow2.f32 %v1194_v3 }
 0xd34   :  { %v1475_v4 = vpop.eup %1474 }
 0xd35   :  { %v747_v5 = vadd.f32 1.0, %v1475_v4 }
 0xd37   :  { %1476 = vrcp.f32 %v747_v5 }
 0xd41   :  { %v1477_v6 = vpop.eup %1476 }
 0xd42   :  { %v750_v7 = vmul.f32 2.0, %v1477_v6  ;;  %v752_v11 = vmul.f32 %v1477_v6, %v658_v56 }
 0xd44   :  { %v1195_v8 = vadd.f32 -1.0, %v750_v7 }
 0xd46   :  { %754 = vrot.lane.b32.xlu0 %v1195_v8, %s1554_s4 }
 0xdb8   :  { %v755_v9 = vpop.permute.xlu0 %754 }
 0xdb9   :  { %v757_v10 = vmul.f32 %v1477_v6, %v755_v9  ;;  %v1087_v9 = vld [vmem:[%s1794_s7] sm:$0xff] }
 0xdbb   :  { %759 = vrot.lane.b32.xlu1 %v757_v10, %s1555_s6  ;;  %v1088_v10 = vld [vmem:[%s1794_s7 + $0x8] sm:$0xff] }
 0xe2d   :  { %v760_v12 = vpop.permute.xlu1 %759 }
 0xe2e   :  { %v762_v13 = vadd.f32 %v760_v12, %v752_v11  ;;  %v1089_v11 = vld [vmem:[%s1794_s7 + $0x10] sm:$0xff]  ;;  %v1435_v12 = vpack.c.bf16 %v1088_v10, %v1087_v9 }
 0xe30   :  { %1478 = vtanh.f32 %v762_v13 }
 0xe3a   :  { %v1479_v14 = vpop.eup %1478 }
 0xe3b   :  { %765 = vrot.lane.b32.xlu0 %v1479_v14, %s1554_s4 }
 0xead   :  { %v766_v15 = vpop.permute.xlu0 %765 }
 0xeae   :  { %v768_v16 = vmul.f32 %v1477_v6, %v766_v15 }
 0xeb0   :  { %770 = vrot.lane.b32.xlu1 %v768_v16, %s1555_s6 }
 0xf22   :  { %v771_v17 = vpop.permute.xlu1 %770 }
 0xf23   :  { %773 = vst.msk [vmem:[#allocation3 + $0x4] sm:$0x1] %vm356_vm6, %v771_v17  ;;  %1342 = vmatmul.mubr.msk.f32.vlgmr.msra.gmra.mrb[6].mxu1 %vm177_vm5, %v771_v17 }
 0xf24   :  { %1430 = vmatpush3.bf16.msra.mxu1 %v1657_v24  ;;  %1363 = vmatprep.mubr.msk.f32.mxu1 %vm1551_vm0, %v1552_v1 }
 0xf25   :  { %1431 = vmatprep.subr.bf16.mxu1 %v1550_v0 }
 0xf28   :  { %1433 = vmatpush3.bf16.msra.mxu1 %v1661_v29 }
 0xff6   :  { %v843_v19 = vpop.f32.mrb[6].mxu1 }
 0xff7   :  { %v847_v20 = vadd.f32 %v843_v19, %v774_v18  ;;  %v1343_v21 = vpop.f32.mrb[7].mxu1  ;;  %v1205_v19 = vld [vmem:[%s1795_s8] ss:$0 sm:$0xff] }
 0xff9   :  { %v1197_v22 = vmul.f32 -1.442695, %v847_v20 }
 0xffb   :  { %1480 = vpow2.f32 %v1197_v22 }
0x1005   :  { %v1481_v23 = vpop.eup %1480 }
0x1006   :  { %v851_v25 = vadd.f32 1.0, %v1481_v23 }
0x1008   :  { %1482 = vrcp.f32 %v851_v25 }
0x1012   :  { %v1483_v26 = vpop.eup %1482 }
0x1013   :  { %v854_v27 = vmul.f32 2.0, %v1483_v26  ;;  %v856_v31 = vmul.f32 %v1483_v26, %v762_v13  ;;  %v1090_v13 = vld [vmem:[%s1794_s7 + $0x18] sm:$0xff] }
0x1014   :  { %v1438_v14 = vpack.c.bf16 %v1090_v13, %v1089_v11 }
0x1015   :  { %v1198_v28 = vadd.f32 -1.0, %v854_v27 }
0x1017   :  { %858 = vrot.lane.b32.xlu0 %v1198_v28, %s1554_s4 }
0x1089   :  { %v859_v24 = vpop.permute.xlu0 %858 }
0x108a   :  { %v861_v30 = vmul.f32 %v1483_v26, %v859_v24 }
0x108c   :  { %863 = vrot.lane.b32.xlu1 %v861_v30, %s1555_s6 }
0x10fe   :  { %v864_v29 = vpop.permute.xlu1 %863 }
0x10ff   :  { %v866_v32 = vadd.f32 %v864_v29, %v856_v31 }
0x1101   :  { %1484 = vtanh.f32 %v866_v32 }
0x110b   :  { %v1485_v33 = vpop.eup %1484 }
0x110c   :  { %869 = vrot.lane.b32.xlu0 %v1485_v33, %s1554_s4 }
0x117e   :  { %v870_v34 = vpop.permute.xlu0 %869 }
0x117f   :  { %v872_v35 = vmul.f32 %v1483_v26, %v870_v34 }
0x1181   :  { %874 = vrot.lane.b32.xlu1 %v872_v35, %s1555_s6 }
0x11f3   :  { %v875_v36 = vpop.permute.xlu1 %874 }
0x11f4   :  { %877 = vst.msk [vmem:[#allocation3 + $0x5] sm:$0x1] %vm356_vm6, %v875_v36  ;;  %1353 = vmatmul.mubr.msk.f32.vlgmr.msra.gmra.mrb[8].mxu0 %vm177_vm5, %v875_v36 }
0x11f5   :  { %1374 = vmatprep.mubr.msk.f32.mxu0 %vm1551_vm0, %v1552_v1  ;;  %1436 = vmatpush3.bf16.msra.mxu0 %v1435_v12 }
0x11f6   :  { %1437 = vmatprep.subr.bf16.mxu0 %v1550_v0 }
0x11f9   :  { %1439 = vmatpush3.bf16.msra.mxu0 %v1438_v14 }
0x12c7   :  { %v947_v38 = vpop.f32.mrb[8].mxu0 }
0x12c8   :  { %v951_v39 = vadd.f32 %v947_v38, %v878_v37  ;;  %v1354_v40 = vpop.f32.mrb[9].mxu0 }
0x12ca   :  { %v1200_v41 = vmul.f32 -1.442695, %v951_v39 }
0x12cc   :  { %1486 = vpow2.f32 %v1200_v41 }
0x12d6   :  { %v1487_v42 = vpop.eup %1486 }
0x12d7   :  { %v955_v43 = vadd.f32 1.0, %v1487_v42 }
0x12d9   :  { %1488 = vrcp.f32 %v955_v43 }
0x12e3   :  { %v1489_v44 = vpop.eup %1488 }
0x12e4   :  { %v958_v45 = vmul.f32 2.0, %v1489_v44  ;;  %v960_v49 = vmul.f32 %v1489_v44, %v866_v32 }
0x12e6   :  { %v1201_v46 = vadd.f32 -1.0, %v958_v45 }
0x12e8   :  { %962 = vrot.lane.b32.xlu0 %v1201_v46, %s1554_s4 }
0x135a   :  { %v963_v47 = vpop.permute.xlu0 %962 }
0x135b   :  { %v965_v48 = vmul.f32 %v1489_v44, %v963_v47 }
0x135d   :  { %967 = vrot.lane.b32.xlu1 %v965_v48, %s1555_s6 }
0x13cf   :  { %v968_v1 = vpop.permute.xlu1 %967 }
0x13d0   :  { %v970_v50 = vadd.f32 %v968_v1, %v960_v49 }
0x13d2   :  { %1490 = vtanh.f32 %v970_v50 }
0x13dc   :  { %v1491_v51 = vpop.eup %1490 }
0x13dd   :  { %973 = vrot.lane.b32.xlu0 %v1491_v51, %s1554_s4 }
0x144f   :  { %v974_v52 = vpop.permute.xlu0 %973 }
0x1450   :  { %v976_v53 = vmul.f32 %v1489_v44, %v974_v52 }
0x1452   :  { %978 = vrot.lane.b32.xlu1 %v976_v53, %s1555_s6 }
0x14c4   :  { %v979_v54 = vpop.permute.xlu1 %978 }
0x14c5   :  { %981 = vst.msk [vmem:[#allocation3 + $0x6] sm:$0x1] %vm356_vm6, %v979_v54  ;;  %1364 = vmatmul.mubr.msk.f32.vlgmr.msra.gmra.mrb[8].mxu1 %vm177_vm5, %v979_v54 }
0x1598   :  { %v1051_v56 = vpop.f32.mrb[8].mxu1 }
0x1599   :  { %v1055_v57 = vadd.f32 %v1051_v56, %v982_v55  ;;  %v1365_v58 = vpop.f32.mrb[9].mxu1 }
0x159b   :  { %v1203_v59 = vmul.f32 -1.442695, %v1055_v57 }
0x159d   :  { %1492 = vpow2.f32 %v1203_v59 }
0x15a7   :  { %v1493_v60 = vpop.eup %1492 }
0x15a8   :  { %v1059_v61 = vadd.f32 1.0, %v1493_v60 }
0x15aa   :  { %1494 = vrcp.f32 %v1059_v61 }
0x15b4   :  { %v1495_v62 = vpop.eup %1494 }
0x15b5   :  { %v1062_v63 = vmul.f32 2.0, %v1495_v62  ;;  %v1064_v5 = vmul.f32 %v1495_v62, %v970_v50 }
0x15b7   :  { %v1204_v2 = vadd.f32 -1.0, %v1062_v63 }
0x15b9   :  { %1066 = vrot.lane.b32.xlu0 %v1204_v2, %s1554_s4 }
0x162b   :  { %v1067_v3 = vpop.permute.xlu0 %1066 }
0x162c   :  { %v1069_v4 = vmul.f32 %v1495_v62, %v1067_v3 }
0x162e   :  { %1071 = vrot.lane.b32.xlu1 %v1069_v4, %s1555_s6 }
0x16a0   :  { %v1072_v6 = vpop.permute.xlu1 %1071 }
0x16a1   :  { %v1074_v7 = vadd.f32 %v1072_v6, %v1064_v5 }
0x16a3   :  { %1496 = vtanh.f32 %v1074_v7 }
0x16ad   :  { %v1497_v8 = vpop.eup %1496 }
0x16ae   :  { %1077 = vrot.lane.b32.xlu0 %v1497_v8, %s1554_s4 }
0x1720   :  { %v1078_v15 = vpop.permute.xlu0 %1077 }
0x1721   :  { %v1080_v16 = vmul.f32 %v1495_v62, %v1078_v15 }
0x1723   :  { %1082 = vrot.lane.b32.xlu1 %v1080_v16, %s1555_s6 }
0x1795   :  { %v1083_v17 = vpop.permute.xlu1 %1082 }
0x1796   :  { %1085 = vst.msk [vmem:[#allocation3 + $0x7] sm:$0x1] %vm356_vm6, %v1083_v17 }
0x179d   :  { %v1086_v18 = vld [vmem:[#allocation3] sm:$0xff] }
0x179e   :  { %1375 = vmatmul.mubr.msk.f32.vlgmr.msra.gmra.mrb[10].mxu0 %vm177_vm5, %v1086_v18 }
0x1871   :  { %v1167_v20 = vpop.f32.mrb[10].mxu0 }
0x1872   :  { %v1168_v21 = vadd.f32 %v1205_v19, %v1167_v20  ;;  %v1376_v22 = vpop.f32.mrb[11].mxu0 }
0x1874   :  { %1172 = vst.msk [vmem:[%s1796_s9] sm:$0xff] %vm1171_vm7, %v1168_v21 }
0x1875   :  { %1177 = vsyncpa [#allocation5], 1 }
0x1876   :  { %1178 = vsyncpa [#allocation7], 1 }

</bundles_post_ra>
